<compile_context>
chip_gen: v7x
topology: tpu7x:2x2x1
jax: 0.10.0
libtpu: 0.0.40
codegen_flags: <defaults>
</compile_context>

<pallas_src>
import functools

import jax
import jax.numpy as jnp
from jax.experimental import pallas as pl
from jax.experimental.pallas import tpu as pltpu


def lstm_rollout_kernel(x_ref, hc0_ref, wx_ref, wh_ref, b_ref,
                        pmul_ref, padd_ref,
                        h_seq_ref, hc_out_ref,
                        h_scr, c_scr):
    """One LSTMCell step per grid iteration; h/c carried in VMEM scratch.

    x_ref     : (1, B, I)  f32   streamed per-step [vrd ; txt] embedding
    hc0_ref   : (B, 2H)    f32   packed initial state [h0 ; c0]          (resident)
    wx_ref    : (I, 4H)    bf16  W_ih^T, i/f/o columns pre-scaled by 0.5 (resident)
    wh_ref    : (H, 4H)    bf16  W_hh^T, i/f/o columns pre-scaled by 0.5 (resident)
    b_ref     : (1, 4H)    f32   b_ih + b_hh, i/f/o pre-scaled by 0.5    (resident)
    pmul_ref  : (1, 4H)    f32   post-tanh multiplier (0.5 on i/f/o, 1 on g)
    padd_ref  : (1, 4H)    f32   post-tanh addend     (0.5 on i/f/o, 0 on g)
    h_seq_ref : (1, B, H)  f32   per-step h output slab block
    hc_out_ref: (B, 2H)    f32   packed final state [h_T ; c_T] (aliased to hc0)
    """
    t = pl.program_id(0)
    H = h_scr.shape[-1]

    @pl.when(t == 0)
    def _():
        h_scr[...] = hc0_ref[:, :H].astype(jnp.float32)
        c_scr[...] = hc0_ref[:, H:].astype(jnp.float32)

    h = h_scr[...]
    c = c_scr[...]

    # Two MXU dots (no in-kernel lane concat); bf16 operands, f32 accumulation.
    gates = (jnp.dot(x_ref[0].astype(wx_ref.dtype), wx_ref[...],
                     preferred_element_type=jnp.float32)
             + jnp.dot(h.astype(wh_ref.dtype), wh_ref[...],
                       preferred_element_type=jnp.float32)
             + b_ref[...])                                        # (B, 4H) f32

    # One full-tile tanh for all four gates.  The 0.5 pre-scale on the i/f/o
    # columns is already folded into wx/wh/b, so
    #   sigmoid(z) = 0.5*tanh(0.5 z) + 0.5   and   tanh(z)
    # collapse to: act = tanh(gates) * pmul + padd (resident per-lane constants;
    # no per-step iota/mask materialisation).
    act = jnp.tanh(gates) * pmul_ref[...] + padd_ref[...]

    i_g = act[:, 0 * H:1 * H]
    f_g = act[:, 1 * H:2 * H]
    g_g = act[:, 2 * H:3 * H]
    o_g = act[:, 3 * H:4 * H]

    c_new = f_g * c + i_g * g_g
    h_new = o_g * jnp.tanh(c_new)

    # Carry state in VMEM scratch across grid steps; emit this step's h.
    h_scr[...] = h_new
    c_scr[...] = c_new
    h_seq_ref[0] = h_new.astype(h_seq_ref.dtype)

    # Finalize: write the packed (h_T, c_T) state once, on the last step.
    @pl.when(t == pl.num_programs(0) - 1)
    def _():
        hc_out_ref[:, :H] = h_new.astype(hc_out_ref.dtype)
        hc_out_ref[:, H:] = c_new.astype(hc_out_ref.dtype)


def prepare_params(w_ih, w_hh, b_ih, b_hh, matmul_dtype=jnp.bfloat16):
    """One-time weight prep, hoisted out of the per-step path.

    w_ih: (4H, I), w_hh: (4H, H), b_ih/b_hh: (4H,)  (PyTorch LSTMCell layout,
    gate order [i, f, g, o]).

    Folds the sigmoid-via-tanh pre-scale (x0.5 on i/f/o columns) into the
    transposed weights/bias and returns the per-lane post-tanh affine constants,
    so per-step gate math in the kernel is one tanh + one mul + one add.
    """
    four_h, _ = w_ih.shape
    H = four_h // 4
    col = jnp.arange(four_h)
    is_g = (col >= 2 * H) & (col < 3 * H)
    pre = jnp.where(is_g, 1.0, 0.5).astype(jnp.float32)                       # (4H,)
    w_x = (w_ih.T.astype(jnp.float32) * pre[None, :]).astype(matmul_dtype)    # (I, 4H)
    w_h = (w_hh.T.astype(jnp.float32) * pre[None, :]).astype(matmul_dtype)    # (H, 4H)
    b = ((b_ih + b_hh) * pre).reshape(1, -1).astype(jnp.float32)              # (1, 4H)
    post_mul = jnp.where(is_g, 1.0, 0.5).reshape(1, -1).astype(jnp.float32)
    post_add = jnp.where(is_g, 0.0, 0.5).reshape(1, -1).astype(jnp.float32)
    return {"w_x": w_x, "w_h": w_h, "b": b,
            "post_mul": post_mul, "post_add": post_add}


@functools.partial(jax.jit, donate_argnums=(1,))
def _lstm_rollout_pallas(x_seq, hc0, w_x, w_h, b, post_mul, post_add):
    """x_seq: (T, B, I); hc0: (B, 2H), donated & aliased to the final-state output.

    Returns (h_seq (T, B, H), hc_final (B, 2H)).
    """
    T, B, I = x_seq.shape
    H = hc0.shape[-1] // 2
    h_seq, hc_final = pl.pallas_call(
        lstm_rollout_kernel,
        out_shape=(
            jax.ShapeDtypeStruct((T, B, H), hc0.dtype),    # contiguous per-step h slab
            jax.ShapeDtypeStruct((B, 2 * H), hc0.dtype),   # packed (h_T, c_T)
        ),
        grid_spec=pltpu.PrefetchScalarGridSpec(
            num_scalar_prefetch=0,
            grid=(T,),
            in_specs=[
                pl.BlockSpec((1, B, I), lambda t: (t, 0, 0)),     # streamed x_t
                pl.BlockSpec((B, 2 * H), lambda t: (0, 0)),       # resident hc0
                pl.BlockSpec((I, 4 * H), lambda t: (0, 0)),       # resident W_x
                pl.BlockSpec((H, 4 * H), lambda t: (0, 0)),       # resident W_h
                pl.BlockSpec((1, 4 * H), lambda t: (0, 0)),       # resident bias
                pl.BlockSpec((1, 4 * H), lambda t: (0, 0)),       # resident post_mul
                pl.BlockSpec((1, 4 * H), lambda t: (0, 0)),       # resident post_add
            ],
            out_specs=[
                pl.BlockSpec((1, B, H), lambda t: (t, 0, 0)),     # per-step h
                pl.BlockSpec((B, 2 * H), lambda t: (0, 0)),       # packed final state
            ],
            scratch_shapes=[pltpu.VMEM((B, H), jnp.float32),      # h carry (f32)
                            pltpu.VMEM((B, H), jnp.float32)],     # c carry (f32)
        ),
        # Packed state input aliases the packed final-state output; with donation
        # at the jit boundary the state update is genuinely in place.
        input_output_aliases={1: 1},
        compiler_params=pltpu.CompilerParams(
            dimension_semantics=("arbitrary",)),   # time axis is recurrent
    )(x_seq, hc0, w_x, w_h, b, post_mul, post_add)
    return h_seq, hc_final


def communicator_rollout(prev_state, vrd_seq, txt_seq, params):
    """T LSTMCell steps in ONE pallas_call.

    prev_state: (h0, c0) each (B, H); vrd_seq: (T, B, Iv); txt_seq: (T, B, It).
    Returns (h_seq (T, B, H), (h_T, c_T)).
    """
    h0, c0 = prev_state
    H = h0.shape[-1]
    # Concats happen outside the kernel: XLA fuses them into the embedding
    # producers, and the kernel avoids cross-lane shuffles entirely.
    x_seq = jnp.concatenate([vrd_seq, txt_seq], axis=-1)
    hc0 = jnp.concatenate([h0, c0], axis=-1)     # fresh buffer -> safe to donate
    h_seq, hc_final = _lstm_rollout_pallas(
        x_seq, hc0, params["w_x"], params["w_h"], params["b"],
        params["post_mul"], params["post_add"])
    return h_seq, (hc_final[:, :H], hc_final[:, H:])


def communicator_forward(prev_state, prev_vrd_action_embedding,
                         prev_text_action_embedding, params):
    """Mirrors Communicator.forward (single step). Returns (output, new_state) = (h1, c1)."""
    _, (h1, c1) = communicator_rollout(
        prev_state,
        prev_vrd_action_embedding[None],
        prev_text_action_embedding[None],
        params)
    return h1, c1


# --------------------------- references (for testing) ---------------------------

def _reference_cell_f32(x, h, c, w_ih, w_hh, b_ih, b_hh):
    gates = x @ w_ih.T + h @ w_hh.T + b_ih + b_hh
    H = h.shape[-1]
    i = jax.nn.sigmoid(gates[:, 0 * H:1 * H])
    f = jax.nn.sigmoid(gates[:, 1 * H:2 * H])
    g = jnp.tanh(gates[:, 2 * H:3 * H])
    o = jax.nn.sigmoid(gates[:, 3 * H:4 * H])
    c1 = f * c + i * g
    h1 = o * jnp.tanh(c1)
    return h1, c1


def _reference_rollout_f32(x_seq, h0, c0, w_ih, w_hh, b_ih, b_hh):
    hs, (h, c) = [], (h0, c0)
    for t in range(x_seq.shape[0]):
        h, c = _reference_cell_f32(x_seq[t], h, c, w_ih, w_hh, b_ih, b_hh)
        hs.append(h)
    return jnp.stack(hs), h, c


def _emulated_rollout_bf16(x_seq, h0, c0, params):
    """Matches the kernel's arithmetic (bf16 MXU operands, folded pre-scale)."""
    H = h0.shape[-1]
    hs, (h, c) = [], (h0, c0)
    for t in range(x_seq.shape[0]):
        gates = (jnp.dot(x_seq[t].astype(jnp.bfloat16), params["w_x"],
                         preferred_element_type=jnp.float32)
                 + jnp.dot(h.astype(jnp.bfloat16), params["w_h"],
                           preferred_element_type=jnp.float32)
                 + params["b"])
        act = jnp.tanh(gates) * params["post_mul"] + params["post_add"]
        i = act[:, 0 * H:1 * H]
        f = act[:, 1 * H:2 * H]
        g = act[:, 2 * H:3 * H]
        o = act[:, 3 * H:4 * H]
        c = f * c + i * g
        h = o * jnp.tanh(c)
        hs.append(h)
    return jnp.stack(hs), h, c


if __name__ == "__main__":
    # Shapes consistent with the module:
    #   action_embed_size = 32 (vrd 16 + text 16), state_embed_size (hidden) = 32
    B = 8
    VRD_E, TXT_E = 16, 16
    ACTION_E = VRD_E + TXT_E          # LSTMCell input_size
    H = 32                            # LSTMCell hidden_size
    T = 8                             # rollout length for the timestep-batched path

    key = jax.random.PRNGKey(0)
    k = jax.random.split(key, 10)

    # PyTorch-style U(-1/sqrt(H), 1/sqrt(H)) init.
    bound = 1.0 / (H ** 0.5)
    w_ih = jax.random.uniform(k[0], (4 * H, ACTION_E), jnp.float32, -bound, bound)
    w_hh = jax.random.uniform(k[1], (4 * H, H), jnp.float32, -bound, bound)
    b_ih = jax.random.uniform(k[2], (4 * H,), jnp.float32, -bound, bound)
    b_hh = jax.random.uniform(k[3], (4 * H,), jnp.float32, -bound, bound)
    params = prepare_params(w_ih, w_hh, b_ih, b_hh)   # one-time prep, not per step

    h0 = jax.random.normal(k[4], (B, H), jnp.float32)
    c0 = jax.random.normal(k[5], (B, H), jnp.float32)

    # ---- single-step forward (matches the PyTorch module exactly) ----
    prev_vrd = jax.random.normal(k[6], (B, VRD_E), jnp.float32)
    prev_txt = jax.random.normal(k[7], (B, TXT_E), jnp.float32)
    output, new_state = communicator_forward((h0, c0), prev_vrd, prev_txt, params)
    output, new_state = jax.block_until_ready((output, new_state))

    x1 = jnp.concatenate([prev_vrd, prev_txt], axis=-1)
    h_ref, c_ref = _reference_cell_f32(x1, h0, c0, w_ih, w_hh, b_ih, b_hh)
    assert jnp.allclose(output, h_ref, atol=2e-2, rtol=2e-2)
    assert jnp.allclose(new_state, c_ref, atol=2e-2, rtol=2e-2)
    _, h_em1, c_em1 = _emulated_rollout_bf16(x1[None], h0, c0, params)
    assert jnp.allclose(output, h_em1, atol=5e-3, rtol=5e-3)
    assert jnp.allclose(new_state, c_em1, atol=5e-3, rtol=5e-3)

    # ---- timestep-batched rollout: T steps inside ONE pallas_call ----
    vrd_seq = jax.random.normal(k[8], (T, B, VRD_E), jnp.float32)
    txt_seq = jax.random.normal(k[9], (T, B, TXT_E), jnp.float32)
    h_seq, (h_T, c_T) = communicator_rollout((h0, c0), vrd_seq, txt_seq, params)
    h_seq, h_T, c_T = jax.block_until_ready((h_seq, h_T, c_T))

    x_seq = jnp.concatenate([vrd_seq, txt_seq], axis=-1)
    hs_f32, hT_f32, cT_f32 = _reference_rollout_f32(x_seq, h0, c0, w_ih, w_hh, b_ih, b_hh)
    assert jnp.allclose(h_seq, hs_f32, atol=5e-2, rtol=5e-2)
    assert jnp.allclose(h_T, hT_f32, atol=5e-2, rtol=5e-2)
    assert jnp.allclose(c_T, cT_f32, atol=5e-2, rtol=5e-2)

    hs_em, hT_em, cT_em = _emulated_rollout_bf16(x_seq, h0, c0, params)
    assert jnp.allclose(h_seq, hs_em, atol=5e-3, rtol=5e-3)
    assert jnp.allclose(h_T, hT_em, atol=5e-3, rtol=5e-3)
    assert jnp.allclose(c_T, cT_em, atol=5e-3, rtol=5e-3)

    print("KERNEL_OK")
</pallas_src>

<mosaic_0001>
module attributes {stable_mosaic.version = 11 : i64} {
  func.func @lstm_rollout_kernel(%arg0: i32, %arg1: memref<1x8x32xf32, #tpu.memory_space<vmem>>, %arg2: memref<8x64xf32, #tpu.memory_space<vmem>>, %arg3: memref<32x128xbf16, #tpu.memory_space<vmem>>, %arg4: memref<32x128xbf16, #tpu.memory_space<vmem>>, %arg5: memref<1x128xf32, #tpu.memory_space<vmem>>, %arg6: memref<1x128xf32, #tpu.memory_space<vmem>>, %arg7: memref<1x128xf32, #tpu.memory_space<vmem>>, %arg8: memref<1x8x32xf32, #tpu.memory_space<vmem>>, %arg9: memref<8x64xf32, #tpu.memory_space<vmem>>, %arg10: memref<8x32xf32, #tpu.memory_space<vmem>>, %arg11: memref<8x32xf32, #tpu.memory_space<vmem>>) attributes {dimension_semantics = [#tpu.dimension_semantics<arbitrary>], iteration_bounds = array<i64: 1>, scalar_prefetch = 0 : i64, scratch_operands = 2 : i64, tpu.core_type = #tpu.core_type<tc>, window_params = [{transform_indices = @transform_0, window_bounds = array<i64: 1, 8, 32>}, {pipeline_mode = #tpu.pipeline_mode<synchronous>, transform_indices = @transform_1, window_bounds = array<i64: 8, 64>}, {pipeline_mode = #tpu.pipeline_mode<synchronous>, transform_indices = @transform_2, window_bounds = array<i64: 32, 128>}, {pipeline_mode = #tpu.pipeline_mode<synchronous>, transform_indices = @transform_3, window_bounds = array<i64: 32, 128>}, {pipeline_mode = #tpu.pipeline_mode<synchronous>, transform_indices = @transform_4, window_bounds = array<i64: 1, 128>}, {pipeline_mode = #tpu.pipeline_mode<synchronous>, transform_indices = @transform_5, window_bounds = array<i64: 1, 128>}, {pipeline_mode = #tpu.pipeline_mode<synchronous>, transform_indices = @transform_6, window_bounds = array<i64: 1, 128>}, {transform_indices = @transform_7, window_bounds = array<i64: 1, 8, 32>}, {pipeline_mode = #tpu.pipeline_mode<synchronous>, transform_indices = @transform_8, window_bounds = array<i64: 8, 64>}]} {
    %c0_i32 = arith.constant 0 : i32
    %0 = arith.cmpi eq, %arg0, %c0_i32 : i32
    %1 = arith.extui %0 : i1 to i32
    %c0_i32_0 = arith.constant 0 : i32
    %2 = arith.cmpi ne, %1, %c0_i32_0 : i32
    scf.if %2 {
      %c0_27 = arith.constant 0 : index
      %c0_28 = arith.constant 0 : index
      %41 = vector.load %arg2[%c0_27, %c0_28] : memref<8x64xf32, #tpu.memory_space<vmem>>, vector<8x32xf32>
      %c0_29 = arith.constant 0 : index
      %c0_30 = arith.constant 0 : index
      %42 = vector.load %arg10[%c0_29, %c0_30] : memref<8x32xf32, #tpu.memory_space<vmem>>, vector<8x32xf32>
      tpu.vector_store %arg10[%c0_29, %c0_30], %41 {strides = array<i32>} : memref<8x32xf32, #tpu.memory_space<vmem>>, vector<8x32xf32>,
      %c0_31 = arith.constant 0 : index
      %c32 = arith.constant 32 : index
      %43 = vector.load %arg2[%c0_31, %c32] : memref<8x64xf32, #tpu.memory_space<vmem>>, vector<8x32xf32>
      %c0_32 = arith.constant 0 : index
      %c0_33 = arith.constant 0 : index
      %44 = vector.load %arg11[%c0_32, %c0_33] : memref<8x32xf32, #tpu.memory_space<vmem>>, vector<8x32xf32>
      tpu.vector_store %arg11[%c0_32, %c0_33], %43 {strides = array<i32>} : memref<8x32xf32, #tpu.memory_space<vmem>>, vector<8x32xf32>,
    } else {
    }
    %c0 = arith.constant 0 : index
    %c0_1 = arith.constant 0 : index
    %3 = vector.load %arg10[%c0, %c0_1] : memref<8x32xf32, #tpu.memory_space<vmem>>, vector<8x32xf32>
    %c0_2 = arith.constant 0 : index
    %c0_3 = arith.constant 0 : index
    %4 = vector.load %arg11[%c0_2, %c0_3] : memref<8x32xf32, #tpu.memory_space<vmem>>, vector<8x32xf32>
    %c0_4 = arith.constant 0 : index
    %c0_5 = arith.constant 0 : index
    %c0_6 = arith.constant 0 : index
    %5 = vector.load %arg1[%c0_4, %c0_5, %c0_6] : memref<1x8x32xf32, #tpu.memory_space<vmem>>, vector<1x8x32xf32>
    %6 = vector.shape_cast %5 : vector<1x8x32xf32> to vector<8x32xf32>
    %7 = arith.truncf %6 : vector<8x32xf32> to vector<8x32xbf16>
    %c0_7 = arith.constant 0 : index
    %c0_8 = arith.constant 0 : index
    %8 = vector.load %arg3[%c0_7, %c0_8] : memref<32x128xbf16, #tpu.memory_space<vmem>>, vector<32x128xbf16>
    %cst = arith.constant dense<0.000000e+00> : vector<8x128xf32>
    %9 = tpu.matmul %7, %8, %cst {dimension_numbers = #tpu.dot_dimension_numbers<[1], [0], [0], [1], [0, 0, 1, 1], [], []>} : vector<8x32xbf16>, vector<32x128xbf16>, vector<8x128xf32> -> vector<8x128xf32>
    %10 = arith.truncf %3 : vector<8x32xf32> to vector<8x32xbf16>
    %c0_9 = arith.constant 0 : index
    %c0_10 = arith.constant 0 : index
    %11 = vector.load %arg4[%c0_9, %c0_10] : memref<32x128xbf16, #tpu.memory_space<vmem>>, vector<32x128xbf16>
    %cst_11 = arith.constant dense<0.000000e+00> : vector<8x128xf32>
    %12 = tpu.matmul %10, %11, %cst_11 {dimension_numbers = #tpu.dot_dimension_numbers<[1], [0], [0], [1], [0, 0, 1, 1], [], []>} : vector<8x32xbf16>, vector<32x128xbf16>, vector<8x128xf32> -> vector<8x128xf32>
    %13 = arith.addf %9, %12 : vector<8x128xf32>
    %c0_12 = arith.constant 0 : index
    %c0_13 = arith.constant 0 : index
    %14 = vector.load %arg5[%c0_12, %c0_13] : memref<1x128xf32, #tpu.memory_space<vmem>>, vector<1x128xf32>
    %15 = vector.broadcast %14 : vector<1x128xf32> to vector<8x128xf32>
    %16 = arith.addf %13, %15 : vector<8x128xf32>
    %17 = math.tanh %16 : vector<8x128xf32>
    %c0_14 = arith.constant 0 : index
    %c0_15 = arith.constant 0 : index
    %18 = vector.load %arg6[%c0_14, %c0_15] : memref<1x128xf32, #tpu.memory_space<vmem>>, vector<1x128xf32>
    %19 = vector.broadcast %18 : vector<1x128xf32> to vector<8x128xf32>
    %20 = arith.mulf %17, %19 : vector<8x128xf32>
    %c0_16 = arith.constant 0 : index
    %c0_17 = arith.constant 0 : index
    %21 = vector.load %arg7[%c0_16, %c0_17] : memref<1x128xf32, #tpu.memory_space<vmem>>, vector<1x128xf32>
    %22 = vector.broadcast %21 : vector<1x128xf32> to vector<8x128xf32>
    %23 = arith.addf %20, %22 : vector<8x128xf32>
    %24 = vector.extract_strided_slice %23 {offsets = [0, 0], sizes = [8, 32], strides = [1, 1]} : vector<8x128xf32> to vector<8x32xf32>
    %25 = vector.extract_strided_slice %23 {offsets = [0, 32], sizes = [8, 32], strides = [1, 1]} : vector<8x128xf32> to vector<8x32xf32>
    %26 = vector.extract_strided_slice %23 {offsets = [0, 64], sizes = [8, 32], strides = [1, 1]} : vector<8x128xf32> to vector<8x32xf32>
    %27 = vector.extract_strided_slice %23 {offsets = [0, 96], sizes = [8, 32], strides = [1, 1]} : vector<8x128xf32> to vector<8x32xf32>
    %28 = arith.mulf %25, %4 : vector<8x32xf32>
    %29 = arith.mulf %24, %26 : vector<8x32xf32>
    %30 = arith.addf %28, %29 : vector<8x32xf32>
    %31 = math.tanh %30 : vector<8x32xf32>
    %32 = arith.mulf %27, %31 : vector<8x32xf32>
    %c0_18 = arith.constant 0 : index
    %c0_19 = arith.constant 0 : index
    %33 = vector.load %arg10[%c0_18, %c0_19] : memref<8x32xf32, #tpu.memory_space<vmem>>, vector<8x32xf32>
    tpu.vector_store %arg10[%c0_18, %c0_19], %32 {strides = array<i32>} : memref<8x32xf32, #tpu.memory_space<vmem>>, vector<8x32xf32>,
    %c0_20 = arith.constant 0 : index
    %c0_21 = arith.constant 0 : index
    %34 = vector.load %arg11[%c0_20, %c0_21] : memref<8x32xf32, #tpu.memory_space<vmem>>, vector<8x32xf32>
    tpu.vector_store %arg11[%c0_20, %c0_21], %30 {strides = array<i32>} : memref<8x32xf32, #tpu.memory_space<vmem>>, vector<8x32xf32>,
    %c0_22 = arith.constant 0 : index
    %c0_23 = arith.constant 0 : index
    %c0_24 = arith.constant 0 : index
    %35 = vector.load %arg8[%c0_22, %c0_23, %c0_24] : memref<1x8x32xf32, #tpu.memory_space<vmem>>, vector<1x8x32xf32>
    %36 = vector.shape_cast %35 : vector<1x8x32xf32> to vector<8x32xf32>
    %37 = vector.shape_cast %32 : vector<8x32xf32> to vector<1x8x32xf32>
    tpu.vector_store %arg8[%c0_22, %c0_23, %c0_24], %37 {strides = array<i32>} : memref<1x8x32xf32, #tpu.memory_space<vmem>>, vector<1x8x32xf32>,
    %c0_i32_25 = arith.constant 0 : i32
    %38 = arith.cmpi eq, %arg0, %c0_i32_25 : i32
    %39 = arith.extui %38 : i1 to i32
    %c0_i32_26 = arith.constant 0 : i32
    %40 = arith.cmpi ne, %39, %c0_i32_26 : i32
    scf.if %40 {
      %c0_27 = arith.constant 0 : index
      %c0_28 = arith.constant 0 : index
      %41 = vector.load %arg9[%c0_27, %c0_28] : memref<8x64xf32, #tpu.memory_space<vmem>>, vector<8x32xf32>
      tpu.vector_store %arg9[%c0_27, %c0_28], %32 {strides = array<i32>} : memref<8x64xf32, #tpu.memory_space<vmem>>, vector<8x32xf32>,
      %c0_29 = arith.constant 0 : index
      %c32 = arith.constant 32 : index
      %42 = vector.load %arg9[%c0_29, %c32] : memref<8x64xf32, #tpu.memory_space<vmem>>, vector<8x32xf32>
      tpu.vector_store %arg9[%c0_29, %c32], %30 {strides = array<i32>} : memref<8x64xf32, #tpu.memory_space<vmem>>, vector<8x32xf32>,
    } else {
    }
    return
  }
  func.func @transform_0(%arg0: i32) -> (i32, i32, i32) {
    %c0_i32 = arith.constant 0 : i32
    %c0_i32_0 = arith.constant 0 : i32
    %c0_i32_1 = arith.constant 0 : i32
    return %arg0, %c0_i32, %c0_i32_0 : i32, i32, i32
  }
  func.func @transform_1(%arg0: i32) -> (i32, i32) {
    %c0_i32 = arith.constant 0 : i32
    %c0_i32_0 = arith.constant 0 : i32
    %c0_i32_1 = arith.constant 0 : i32
    return %c0_i32, %c0_i32_0 : i32, i32
  }
  func.func @transform_2(%arg0: i32) -> (i32, i32) {
    %c0_i32 = arith.constant 0 : i32
    %c0_i32_0 = arith.constant 0 : i32
    %c0_i32_1 = arith.constant 0 : i32
    return %c0_i32, %c0_i32_0 : i32, i32
  }
  func.func @transform_3(%arg0: i32) -> (i32, i32) {
    %c0_i32 = arith.constant 0 : i32
    %c0_i32_0 = arith.constant 0 : i32
    %c0_i32_1 = arith.constant 0 : i32
    return %c0_i32, %c0_i32_0 : i32, i32
  }
  func.func @transform_4(%arg0: i32) -> (i32, i32) {
    %c0_i32 = arith.constant 0 : i32
    %c0_i32_0 = arith.constant 0 : i32
    %c0_i32_1 = arith.constant 0 : i32
    return %c0_i32, %c0_i32_0 : i32, i32
  }
  func.func @transform_5(%arg0: i32) -> (i32, i32) {
    %c0_i32 = arith.constant 0 : i32
    %c0_i32_0 = arith.constant 0 : i32
    %c0_i32_1 = arith.constant 0 : i32
    return %c0_i32, %c0_i32_0 : i32, i32
  }
  func.func @transform_6(%arg0: i32) -> (i32, i32) {
    %c0_i32 = arith.constant 0 : i32
    %c0_i32_0 = arith.constant 0 : i32
    %c0_i32_1 = arith.constant 0 : i32
    return %c0_i32, %c0_i32_0 : i32, i32
  }
  func.func @transform_7(%arg0: i32) -> (i32, i32, i32) {
    %c0_i32 = arith.constant 0 : i32
    %c0_i32_0 = arith.constant 0 : i32
    %c0_i32_1 = arith.constant 0 : i32
    return %arg0, %c0_i32, %c0_i32_0 : i32, i32, i32
  }
  func.func @transform_8(%arg0: i32) -> (i32, i32) {
    %c0_i32 = arith.constant 0 : i32
    %c0_i32_0 = arith.constant 0 : i32
    %c0_i32_1 = arith.constant 0 : i32
    return %c0_i32, %c0_i32_0 : i32, i32
  }
}

</mosaic_0001>

<bundles_post_ra>
// kernel: _lstm_rollout_pallas.1
= control target key start
LH: loop header
LB: loop body
LE: loop exit
PB: predicated region body
PF: predicated region fallthrough
CT: control target
= control target key end

     0   :  { %14 = vsyncpa [#allocation5], 0  ;;  %s671_s0 = inlined_call_operand.hbm [shape: f32[1,8,32], index: 0, kind: input, shape index: {}]   ;;  %s672_s1 = inlined_call_operand.hbm [shape: f32[8,64], index: 1, kind: input, shape index: {}, may-alias: {1,8}]   ;;  %s673_s2 = inlined_call_operand.hbm [shape: bf16[32,128], index: 2, kind: input, shape index: {}]   ;;  %s674_s3 = inlined_call_operand.hbm [shape: bf16[32,128], index: 3, kind: input, shape index: {}]   ;;  %s675_s4 = inlined_call_operand.vmem [shape: f32[1,128], index: 4, kind: input, shape index: {}]   ;;  %s676_s5 = inlined_call_operand.vmem [shape: f32[1,128], index: 5, kind: input, shape index: {}]   ;;  %s677_s6 = inlined_call_operand.vmem [shape: f32[1,128], index: 6, kind: input, shape index: {}]   ;;  %s678_s7 = inlined_call_operand.hbm [shape: f32[1,8,32], index: 7, kind: output, shape index: {0}]   ;;  %s679_s8 = inlined_call_operand.hbm [shape: f32[8,64], index: 8, kind: output, shape index: {1}, may-alias: {1,8}]  }
   0x1   :  { %15 = vsyncpa [#allocation8], 0 }
   0x2   :  { %16 = vsyncpa [#allocation11], 0 }
   0x3   :  { %17 = vsyncpa [#allocation6], 0 }
   0x4   :  { %18 = vsyncpa [#allocation14], 0  ;;  %s506_s27 = smov [#allocation7]   ;;  %s507_s29 = smov [#allocation4]  }
   0x5   :  { %s35_s28 = sshll.u32 %s506_s27, 4  ;;  %s25_s30 = sshll.u32 %s507_s29, 4  ;;  %s36_s28 = int_to_ptr.vmem [resolvable:$true] %s35_s28  ;;  %s26_s30 = int_to_ptr.vmem [resolvable:$true] %s25_s30 }
   0x6   :  { %s364_s11 = scalar_lea.hbm %s672_s1, 128 }
   0x7   :  { %p365_p0 = scmp.ne.s32.totalorder %s672_s1, %s364_s11  ;;  %p368_p1 = scmp.lt.u32.totalorder %s364_s11, %s672_s1 }
   0x9   :  { %p370_p2 = pnand %p368_p1, %p365_p0 }
   0xb   :  { %373 = shalt.err (!%p370_p2)
}
   0xc   :  { %s374_s16 = scalar_lea.vmem %s36_s28, 128  ;;  %p379_p4 = scmp.lt.s32.totalorder %s36_s28, %s36_s28 }
   0xd   :  { %p375_p3 = scmp.ne.s32.totalorder %s36_s28, %s374_s16  ;;  %p380_p5 = scmp.lt.s32.totalorder %s374_s16, %s374_s16 }
   0xf   :  { %p381_p6 = por %p380_p5, %p379_p4 }
  0x11   :  { %p382_p7 = pnand %p381_p6, %p375_p3 }
  0x13   :  { %385 = shalt.err (!%p382_p7)
}
  0x14   :  { %38 = dma.hbm_to_vmem [thread:$0]  %s672_s1, 128, %s36_s28, [#allocation8]  }
  0x15   :  { %s386_s21 = scalar_lea.hbm %s671_s0, 128 }
  0x16   :  { %p387_p8 = scmp.ne.s32.totalorder %s671_s0, %s386_s21  ;;  %p390_p9 = scmp.lt.u32.totalorder %s386_s21, %s671_s0 }
  0x18   :  { %p392_p10 = pnand %p390_p9, %p387_p8 }
  0x1a   :  { %395 = shalt.err (!%p392_p10)
}
  0x1b   :  { %s396_s26 = scalar_lea.vmem %s26_s30, 128  ;;  %p401_p12 = scmp.lt.s32.totalorder %s26_s30, %s26_s30 }
  0x1c   :  { %p397_p11 = scmp.ne.s32.totalorder %s26_s30, %s396_s26  ;;  %p402_p13 = scmp.lt.s32.totalorder %s396_s26, %s396_s26 }
  0x1e   :  { %p403_p0 = por %p402_p13, %p401_p12 }
  0x20   :  { %p404_p1 = pnand %p403_p0, %p397_p11 }
  0x22   :  { %407 = shalt.err (!%p404_p1)
}
  0x23   :  { %28 = dma.hbm_to_vmem [thread:$0]  %s671_s0, 128, %s26_s30, [#allocation5]  }
  0x24   :  { %s508_s28 = smov [#allocation9]   ;;  %s408_s11 = scalar_lea.hbm %s673_s2, 256 }
  0x25   :  { %s44_s29 = sshll.u32 %s508_s28, 4  ;;  %p409_p2 = scmp.ne.s32.totalorder %s673_s2, %s408_s11  ;;  %s45_s29 = int_to_ptr.vmem [resolvable:$true] %s44_s29 }
  0x26   :  { %p412_p3 = scmp.lt.u32.totalorder %s408_s11, %s673_s2 }
  0x28   :  { %p414_p4 = pnand %p412_p3, %p409_p2 }
  0x2a   :  { %417 = shalt.err (!%p414_p4)
}
  0x2b   :  { %s418_s16 = scalar_lea.vmem %s45_s29, 256  ;;  %p423_p6 = scmp.lt.s32.totalorder %s45_s29, %s45_s29 }
  0x2c   :  { %p419_p5 = scmp.ne.s32.totalorder %s45_s29, %s418_s16  ;;  %p424_p7 = scmp.lt.s32.totalorder %s418_s16, %s418_s16 }
  0x2e   :  { %p425_p8 = por %p424_p7, %p423_p6 }
  0x30   :  { %p426_p9 = pnand %p425_p8, %p419_p5 }
  0x32   :  { %429 = shalt.err (!%p426_p9)
}
  0x33   :  { %s509_s0 = smov 64   ;;  %s510_s30 = smov 4  }
  0x34   :  { %50 = dma.hbm_to_vmem [thread:$0]  %s673_s2, 256, %s45_s29, [#allocation8], %s509_s0, %s509_s0, %s510_s30  }
  0x35   :  { %s511_s19 = smov [#allocation10]   ;;  %s430_s23 = scalar_lea.hbm %s674_s3, 256 }
  0x36   :  { %s56_s20 = sshll.u32 %s511_s19, 4  ;;  %p431_p10 = scmp.ne.s32.totalorder %s674_s3, %s430_s23  ;;  %s57_s20 = int_to_ptr.vmem [resolvable:$true] %s56_s20 }
  0x37   :  { %p434_p11 = scmp.lt.u32.totalorder %s430_s23, %s674_s3 }
  0x39   :  { %p436_p12 = pnand %p434_p11, %p431_p10 }
  0x3b   :  { %439 = shalt.err (!%p436_p12)
}
  0x3c   :  { %s440_s27 = scalar_lea.vmem %s57_s20, 256  ;;  %p445_p0 = scmp.lt.s32.totalorder %s57_s20, %s57_s20 }
  0x3d   :  { %p441_p13 = scmp.ne.s32.totalorder %s57_s20, %s440_s27  ;;  %p446_p1 = scmp.lt.s32.totalorder %s440_s27, %s440_s27 }
  0x3f   :  { %p447_p2 = por %p446_p1, %p445_p0 }
  0x41   :  { %p448_p3 = pnand %p447_p2, %p441_p13 }
  0x43   :  { %451 = shalt.err (!%p448_p3)
}
  0x44   :  { %62 = dma.hbm_to_vmem [thread:$0]  %s674_s3, 256, %s57_s20, [#allocation11], %s509_s0, %s509_s0, %s510_s30  }
  0x45   :  { %496 = dma.done.wait [#allocation5], 128  }
  0x46   :  { %497 = vsyncadd [#allocation5], 4294967168 }
  0x47   :  { %498 = dma.done.wait [#allocation8], 384  }
  0x48   :  { %499 = vsyncadd [#allocation8], 4294966912 }
  0x49   :  { %500 = dma.done.wait [#allocation11], 256  }
  0x4a   :  { %501 = vsyncadd [#allocation11], 4294967040  ;;  %v512_v0 = vmov 0.0   ;;  %vm513_vm0 = vmmov 0   ;;  %v356_v1 = vld [vmem:[#allocation9] sm:$0xff]   ;;  %vm87_vm1 = vcmask 261120  }
  0x4b   :  { %336 = vmatprep.subr.bf16.mxu1 %v512_v0  ;;  %328 = vmatprep.subr.bf16.mxu0 %v512_v0  ;;  %v357_v2 = vld [vmem:[#allocation10] sm:$0xff]   ;;  %v89_v3 = vld [vmem:[#allocation7] sm:$0xff]  ;;  %s514_s29 = smov 96   ;;  %v358_v4 = vld [vmem:[#allocation9 + $0x8] sm:$0xff]   ;;  %s515_s3 = smov 32   ;;  %vm280_vm2 = vcmask 523520  }
  0x4c   :  { %340 = vmatprep.mubr.msk.bf16.mxu1 %vm513_vm0, %v512_v0  ;;  %332 = vmatprep.mubr.msk.bf16.mxu0 %vm513_vm0, %v512_v0  ;;  %88 = vst.msk [vmem:[#allocation2] sm:$0xff] %vm87_vm1, %v89_v3  ;;  %v359_v5 = vld [vmem:[#allocation10 + $0x8] sm:$0xff]   ;;  %v97_v6 = vld [vmem:[#allocation4] sm:$0xff]  ;;  %v319_v17 = vld [vmem:[%s675_s4] ss:$0 sm:$0xff]  ;;  %s516_s4 = smov [#allocation12]  }
  0x4d   :  { %337 = vmatpush3.bf16.msra.mxu1 %v356_v1  ;;  %329 = vmatpush3.bf16.msra.mxu0 %v357_v2  ;;  %v98_v7 = vpack.c.bf16 %v97_v6, %v97_v6  ;;  %v320_v23 = vld [vmem:[%s676_s5] ss:$0 sm:$0xff]  ;;  %s288_s5 = sshll.u32 %s516_s4, 4  ;;  %s289_s5 = int_to_ptr.vmem [resolvable:$true] %s288_s5 }
  0x4e   :  { %91 = vrot.lane.b32.xlu0 %v89_v3, %s514_s29  ;;  %338 = vmatprep.subr.bf16.mxu1 %v512_v0  ;;  %v321_v25 = vld [vmem:[%s677_s6] ss:$0 sm:$0xff]  ;;  %s517_s6 = smov [#allocation13]   ;;  %s452_s16 = scalar_lea.vmem %s289_s5, 128 }
  0x4f   :  { %330 = vmatprep.subr.bf16.mxu0 %v512_v0  ;;  %s298_s15 = sshll.u32 %s517_s6, 4  ;;  %p453_p4 = scmp.ne.s32.totalorder %s289_s5, %s452_s16  ;;  %s636_s15 = int_to_ptr.vmem [resolvable:$true] %s298_s15 }
  0x50   :  { %p457_p5 = scmp.lt.s32.totalorder %s289_s5, %s289_s5  ;;  %p458_p6 = scmp.lt.s32.totalorder %s452_s16, %s452_s16 }
  0x51   :  { %339 = vmatpush3.bf16.msra.mxu1 %v358_v4  ;;  %331 = vmatpush3.bf16.msra.mxu0 %v359_v5 }
  0x52   :  { %p459_p7 = por %p458_p6, %p457_p5 }
  0x53   :  { %v95_v8 = vld [vmem:[#allocation2] sm:$0xff] }
  0x54   :  { %341 = vmatmul.mubr.msk.bf16.vlgmr.msra.gmra.mrb[0].mxu1 %vm87_vm1, %v98_v7  ;;  %v103_v9 = vpack.c.bf16 %v95_v8, %v95_v8  ;;  %p460_p8 = pnand %p459_p7, %p453_p4 }
  0x56   :  { %333 = vmatmul.mubr.msk.bf16.vlgmr.msra.gmra.mrb[0].mxu0 %vm87_vm1, %v103_v9 }
  0xc0   :  { %v92_v10 = vpop.permute.xlu0 %91 }
  0xc1   :  { %94 = vst.msk [vmem:[#allocation3] sm:$0xff] %vm87_vm1, %v92_v10 }
  0xc8   :  { %v96_v11 = vld [vmem:[#allocation3] sm:$0xff] }
  0xc9   :  { %245 = vrot.lane.b32.xlu1 %v96_v11, %s515_s3 }
 0x127   :  { %v213_v12 = vpop.f32.mrb[0].mxu1 }
 0x128   :  { %v342_v13 = vpop.f32.mrb[1].mxu1 }
 0x129   :  { %v216_v14 = vpop.f32.mrb[2].mxu1  ;;  %v158_v16 = vpop.f32.mrb[0].mxu0 }
 0x12a   :  { %v343_v15 = vpop.f32.mrb[3].mxu1  ;;  %v214_v18 = vadd.f32 %v213_v12, %v158_v16  ;;  %v334_v19 = vpop.f32.mrb[1].mxu0 }
 0x12b   :  { %v161_v20 = vpop.f32.mrb[2].mxu0 }
 0x12c   :  { %v226_v21 = vadd.f32 %v319_v17, %v214_v18  ;;  %v335_v22 = vpop.f32.mrb[3].mxu0 }
 0x12e   :  { %360 = vtanh.f32 %v226_v21 }
 0x138   :  { %v361_v24 = vpop.eup %360 }
 0x139   :  { %v235_v26 = vmul.f32 %v361_v24, %v320_v23 }
 0x13b   :  { %v243_v27 = vadd.f32 %v321_v25, %v235_v26  ;;  %v246_v30 = vpop.permute.xlu1 %245 }
 0x13d   :  { %250 = vrot.lane.b32.xlu0 %v243_v27, %s509_s0  ;;  %v248_v31 = vmul.f32 %v246_v30, %v243_v27 }
 0x1af   :  { %v251_v28 = vpop.permute.xlu0 %250 }
 0x1b0   :  { %v253_v29 = vmul.f32 %v251_v28, %v243_v27 }
 0x1b2   :  { %255 = vrot.lane.b32.xlu1 %v253_v29, %s515_s3 }
 0x224   :  { %v256_v32 = vpop.permute.xlu1 %255 }
 0x225   :  { %v258_v33 = vadd.f32 %v256_v32, %v248_v31 }
 0x227   :  { %362 = vtanh.f32 %v258_v33 }
 0x231   :  { %v363_v34 = vpop.eup %362 }
 0x232   :  { %261 = vrot.lane.b32.xlu0 %v363_v34, %s509_s0 }
 0x236   :  { %271 = vrot.lane.b32.xlu0 %v258_v33, %s514_s29 }
 0x2a4   :  { %v262_v35 = vpop.permute.xlu0 %261 }
 0x2a5   :  { %v264_v36 = vmul.f32 %v262_v35, %v243_v27 }
 0x2a7   :  { %266 = vrot.lane.b32.xlu1 %v264_v36, %s515_s3 }
 0x2a8   :  { %v272_v37 = vpop.permute.xlu0 %271 }
 0x2a9   :  { %274 = vst.msk [vmem:[#allocation3] sm:$0xff] %vm87_vm1, %v272_v37 }
 0x319   :  { %v267_v38 = vpop.permute.xlu1 %266 }
 0x31a   :  { %269 = vst.msk [vmem:[#allocation2] sm:$0xff] %vm87_vm1, %v267_v38  ;;  %279 = vst.msk [vmem:[#allocation13] sm:$0xff] %vm87_vm1, %v267_v38 }
 0x31b   :  { %275 = vst.msk [vmem:[#allocation12] sm:$0xff] %vm87_vm1, %v267_v38 }
 0x31c   :  { %463 = shalt.err (!%p460_p8)
}
 0x31d   :  { %s464_s17 = scalar_lea.hbm %s678_s7, 128 }
 0x31e   :  { %p465_p9 = scmp.ne.s32.totalorder %s678_s7, %s464_s17  ;;  %p468_p10 = scmp.lt.u32.totalorder %s464_s17, %s678_s7 }
 0x320   :  { %p470_p11 = pnand %p468_p10, %p465_p9 }
 0x322   :  { %473 = shalt.err (!%p470_p11)
}
 0x323   :  { %291 = dma.vmem_to_hbm [thread:$0]  %s289_s5, 128, %s678_s7, [#allocation6]   ;;  %281 = vst.msk [vmem:[#allocation13] sm:$0xff] %vm280_vm2, %v258_v33 }
 0x324   :  { %s474_s24 = scalar_lea.vmem %s636_s15, 128  ;;  %p479_p13 = scmp.lt.s32.totalorder %s636_s15, %s636_s15 }
 0x325   :  { %p475_p12 = scmp.ne.s32.totalorder %s636_s15, %s474_s24  ;;  %p480_p0 = scmp.lt.s32.totalorder %s474_s24, %s474_s24 }
 0x327   :  { %p481_p1 = por %p480_p0, %p479_p13 }
 0x329   :  { %p482_p2 = pnand %p481_p1, %p475_p12 }
 0x32b   :  { %485 = shalt.err (!%p482_p2)
}
 0x32c   :  { %s486_s1 = scalar_lea.hbm %s679_s8, 128 }
 0x32d   :  { %p487_p3 = scmp.ne.s32.totalorder %s679_s8, %s486_s1  ;;  %p490_p4 = scmp.lt.u32.totalorder %s486_s1, %s679_s8 }
 0x32f   :  { %p492_p5 = pnand %p490_p4, %p487_p3 }
 0x331   :  { %495 = shalt.err (!%p492_p5)
}
 0x332   :  { %301 = dma.vmem_to_hbm [thread:$0]  %s636_s15, 128, %s679_s8, [#allocation14]  }
 0x333   :  { %502 = dma.done.wait [#allocation6], 128  }
 0x334   :  { %503 = vsyncadd [#allocation6], 4294967168 }
 0x335   :  { %504 = dma.done.wait [#allocation14], 128  }
 0x336   :  { %505 = vsyncadd [#allocation14], 4294967168 }
 0x337   :  { %308 = vsyncpa [#allocation5], 1 }
 0x338   :  { %309 = vsyncpa [#allocation8], 1 }
 0x339   :  { %310 = vsyncpa [#allocation11], 1 }
 0x33a   :  { %311 = vsyncpa [#allocation6], 1 }
 0x33b   :  { %312 = vsyncpa [#allocation14], 1 }

</bundles_post_ra>
